<compile_context>
chip_gen: v7x
topology: tpu7x:2x2x1
jax: 0.10.0
libtpu: 0.0.40
codegen_flags: <defaults>
</compile_context>

<pallas_src>
import functools

import jax
import jax.numpy as jnp
from jax.experimental import pallas as pl
from jax.experimental.pallas import tpu as pltpu


_FALLBACK_VMEM_BUDGET = 48 * 1024 * 1024  # safe on v7x's 64 MiB VMEM


def _round_up(v: int, m: int) -> int:
    return (v + m - 1) // m * m


def _vmem_budget() -> int:
    """~70% of physical VMEM (generation-aware), with a conservative fallback."""
    try:
        cap = getattr(pltpu.get_tpu_info(), "vmem_capacity_bytes", None)
        if cap:
            return int(cap * 0.7)
    except Exception:  # pragma: no cover - e.g. CPU tracing
        pass
    return _FALLBACK_VMEM_BUDGET


def _vmem_bytes_estimate(n_pad: int, tile_d: int, b_pad: int,
                         x_itemsize: int) -> int:
    f32 = 4
    # Pipelined I/O blocks (double-buffered).
    io = 2 * n_pad * tile_d * x_itemsize          # x tile
    io += 2 * n_pad * tile_d * x_itemsize         # output tile
    io += 2 * 3 * tile_d * f32                    # weight / bias / mean_scale
    io += 2 * n_pad * 4                           # batch row ids
    io += 2 * b_pad * 128 * f32                   # inv_counts (lane-padded)
    # In-kernel temporaries (worst case f32).
    tmp = b_pad * n_pad * f32                     # one-hot (B, N)
    tmp += 2 * n_pad * tile_d * f32               # x^2 temp + f32 view of x
    tmp += 2 * n_pad * tile_d * f32               # gathered [mean | scale]
    tmp += 4 * b_pad * tile_d * f32               # per-graph sums / stats
    return int((io + tmp) * 1.25)                 # headroom


def _pick_tile_d(d_pad: int, n_pad: int, b_pad: int, x_itemsize: int,
                 budget: int) -> int:
    """Largest 128-multiple tile that fits the budget (tile need NOT divide d_pad)."""
    max_tile = min(d_pad, 2048)
    tile = 128
    for t in range(max_tile, 0, -128):
        if _vmem_bytes_estimate(n_pad, t, b_pad, x_itemsize) <= budget:
            tile = t
            break
    # TODO(synk): if even a 128-lane tile exceeds the budget (huge N), a
    # two-phase N-tiled kernel is required; we fall back to 128 here.
    # Prefer >=2 grid steps (v7x megacore split + DMA/compute overlap) when the
    # feature dim can be split into two >=128-lane tiles.
    if tile == d_pad and d_pad >= 256:
        tile = _round_up(pl.cdiv(d_pad, 2), 128)
    return tile


def _graphnorm_kernel(batch_row_ref, inv_counts_ref, x_ref, w_ref, bias_ref,
                      ms_ref, o_ref, *, num_graphs_padded: int, eps: float):
    n_nodes, tile_d = x_ref.shape
    num_b = num_graphs_padded

    x = x_ref[...]                                           # (N, TD)
    br = batch_row_ref[...]                                  # (1, N) int32
    inv_c = inv_counts_ref[...]                              # (B, 1) f32

    # Keep bf16 inputs in bf16 for the scatter matmuls (0/1 one-hot is exact in
    # bf16; accumulation is f32).  Note the squares are then bf16-rounded.
    work_dtype = jnp.bfloat16 if x.dtype == jnp.bfloat16 else jnp.float32
    xw = x.astype(work_dtype)

    # (B, N) one-hot segment matrix, built directly (no transposes; tiny B).
    gid_bn = jax.lax.broadcasted_iota(jnp.int32, (num_b, n_nodes), 0)
    onehot_bn = (gid_bn == br).astype(work_dtype)            # (B, N)

    # ---- Stage 1: two scatter matmuls with the same stationary one-hot LHS.
    sum_x = jnp.dot(onehot_bn, xw, preferred_element_type=jnp.float32)
    sum_x2 = jnp.dot(onehot_bn, xw * xw, preferred_element_type=jnp.float32)
    mean = sum_x * inv_c                                     # (B, TD) E[x]
    ex2 = sum_x2 * inv_c                                     # (B, TD) E[x^2]

    ms = ms_ref[...]                                         # (1, TD)
    w = w_ref[...]                                           # (1, TD)
    # var(x - ms*mean) = E[x^2] - ms*(2-ms)*mean^2  (clamped vs. cancellation)
    var = jnp.maximum(ex2 - ms * (2.0 - ms) * mean * mean, 0.0)
    g_mean = ms * mean                                       # (B, TD)
    g_scale = w * jax.lax.rsqrt(var + eps)                   # (B, TD), EUP rsqrt

    # ---- Stage 2: one gather matmul (transposed one-hot LHS) of both stats.
    stats = jnp.concatenate([g_mean, g_scale], axis=-1)      # (B, 2*TD)
    onehot_g = onehot_bn if work_dtype == jnp.float32 else onehot_bn.astype(
        jnp.float32)
    gathered = jax.lax.dot_general(                          # (N, 2*TD)
        onehot_g, stats,
        dimension_numbers=(((0,), (0,)), ((), ())),
        preferred_element_type=jnp.float32)
    mean_n = gathered[:, :tile_d]
    scale_n = gathered[:, tile_d:]

    # weight * (x - ms*mean[batch]) / std + bias
    xf = x.astype(jnp.float32)
    o_ref[...] = ((xf - mean_n) * scale_n + bias_ref[...]).astype(o_ref.dtype)


def graph_norm(x, batch, weight, bias, mean_scale, *, num_graphs: int,
               eps: float = 1e-6):
    """Pallas GraphNorm forward.

    x:          [N, D] float (f32 or bf16)
    batch:      [N]    int graph id per node
    weight/bias/mean_scale: [D] float
    num_graphs: static Python int (== int(batch.max()) + 1 in the torch code)
    """
    n, d = x.shape
    n_pad = _round_up(max(n, 8), 8)
    d_pad = _round_up(max(d, 128), 128)
    has_node_pad = n_pad > n
    # Phantom graph id for padded nodes; pad B to a multiple of 8 so the (B,N)
    # one-hot and (B,TD) stats have clean sublane layout.
    b_pad = _round_up(num_graphs + (1 if has_node_pad else 0), 8)
    pad_gid = num_graphs

    batch_i32 = batch.astype(jnp.int32)
    x_p = jnp.pad(x, ((0, n_pad - n), (0, d_pad - d)))
    batch_row = jnp.pad(batch_i32, (0, n_pad - n),
                        constant_values=pad_gid).reshape(1, n_pad)

    # Hoisted per-graph inverse counts (tiny segment-sum, computed once instead
    # of an XLU reduction per D tile per core).
    counts = jax.ops.segment_sum(jnp.ones((n,), jnp.float32), batch_i32,
                                 num_segments=num_graphs)
    inv_counts = 1.0 / jnp.maximum(counts, 1.0)
    inv_counts = jnp.pad(inv_counts, (0, b_pad - num_graphs),
                         constant_values=1.0).reshape(b_pad, 1)

    w_p = jnp.pad(weight.astype(jnp.float32), (0, d_pad - d)).reshape(1, d_pad)
    b_p = jnp.pad(bias.astype(jnp.float32), (0, d_pad - d)).reshape(1, d_pad)
    ms_p = jnp.pad(mean_scale.astype(jnp.float32),
                   (0, d_pad - d)).reshape(1, d_pad)

    budget = _vmem_budget()
    tile_d = _pick_tile_d(d_pad, n_pad, b_pad, x.dtype.itemsize, budget)
    grid = (pl.cdiv(d_pad, tile_d),)   # ragged last tile is fine (per-column stats)

    kernel = functools.partial(_graphnorm_kernel,
                               num_graphs_padded=b_pad, eps=float(eps))

    out_p = pl.pallas_call(
        kernel,
        out_shape=jax.ShapeDtypeStruct((n_pad, d_pad), x.dtype),
        grid=grid,
        in_specs=[
            pl.BlockSpec((1, n_pad), lambda j: (0, 0)),        # batch row ids
            pl.BlockSpec((b_pad, 1), lambda j: (0, 0)),        # inv counts
            pl.BlockSpec((n_pad, tile_d), lambda j: (0, j)),   # x tile
            pl.BlockSpec((1, tile_d), lambda j: (0, j)),       # weight tile
            pl.BlockSpec((1, tile_d), lambda j: (0, j)),       # bias tile
            pl.BlockSpec((1, tile_d), lambda j: (0, j)),       # mean_scale tile
        ],
        out_specs=pl.BlockSpec((n_pad, tile_d), lambda j: (0, j)),
        compiler_params=pltpu.CompilerParams(
            dimension_semantics=("parallel",),
            vmem_limit_bytes=budget),
    )(batch_row, inv_counts, x_p, w_p, b_p, ms_p)

    return out_p[:n, :d]


def _reference(x, batch, weight, bias, mean_scale, *, num_graphs, eps=1e-6):
    """Pure-JAX reference mirroring the PyTorch forward."""
    counts = jnp.maximum(
        jax.ops.segment_sum(jnp.ones((x.shape[0],)), batch, num_graphs), 1.0)
    mean = jax.ops.segment_sum(x, batch, num_graphs) / counts[:, None]
    out = x - mean[batch] * mean_scale
    var = jax.ops.segment_sum(out * out, batch, num_graphs) / counts[:, None]
    std = jnp.sqrt(var + eps)[batch]
    return weight * out / std + bias


if __name__ == "__main__":
    key = jax.random.PRNGKey(0)
    k1, k2 = jax.random.split(key)

    gn = jax.jit(graph_norm, static_argnames=("num_graphs", "eps"))

    # --- Test 1: module-consistent small shape (8 nodes, in_dim=32, 2 graphs),
    #     default-initialised affine params (weight=1, bias=0, mean_scale=1).
    N, D = 8, 32
    x = jax.random.normal(k1, (N, D), dtype=jnp.float32)
    batch = jnp.array([0, 0, 0, 1, 1, 1, 1, 1], dtype=jnp.int32)
    weight = jnp.ones((D,), jnp.float32)
    bias = jnp.zeros((D,), jnp.float32)
    mean_scale = jnp.ones((D,), jnp.float32)

    y = jax.block_until_ready(
        gn(x, batch, weight, bias, mean_scale, num_graphs=2, eps=1e-6))
    y_ref = _reference(x, batch, weight, bias, mean_scale, num_graphs=2, eps=1e-6)
    assert jnp.allclose(y, y_ref, atol=1e-4, rtol=1e-4), "test 1 mismatch"

    # --- Test 2: exercises node/graph padding and the ragged multi-tile grid
    #     (D=600 -> d_pad=640 -> two tiles, last one partial), non-trivial
    #     affine params.
    N2, D2, G2 = 21, 600, 3
    kx, kw, kb, km, kbt = jax.random.split(k2, 5)
    x2 = jax.random.normal(kx, (N2, D2), dtype=jnp.float32)
    batch2 = jnp.sort(jax.random.randint(kbt, (N2,), 0, G2)).astype(jnp.int32)
    w2 = jax.random.normal(kw, (D2,), jnp.float32)
    b2 = jax.random.normal(kb, (D2,), jnp.float32)
    m2 = jax.random.normal(km, (D2,), jnp.float32)

    y2 = jax.block_until_ready(
        gn(x2, batch2, w2, b2, m2, num_graphs=G2, eps=1e-6))
    y2_ref = _reference(x2, batch2, w2, b2, m2, num_graphs=G2, eps=1e-6)
    assert jnp.allclose(y2, y2_ref, atol=1e-3, rtol=1e-3), "test 2 mismatch"

    print("KERNEL_OK")
</pallas_src>

<mosaic_0001>
module attributes {stable_mosaic.version = 11 : i64} {
  func.func @_graphnorm_kernel(%arg0: i32, %arg1: memref<1x8xi32, #tpu.memory_space<vmem>>, %arg2: memref<8x1xf32, #tpu.memory_space<vmem>>, %arg3: memref<8x128xf32, #tpu.memory_space<vmem>>, %arg4: memref<1x128xf32, #tpu.memory_space<vmem>>, %arg5: memref<1x128xf32, #tpu.memory_space<vmem>>, %arg6: memref<1x128xf32, #tpu.memory_space<vmem>>, %arg7: memref<8x128xf32, #tpu.memory_space<vmem>>) attributes {dimension_semantics = [#tpu.dimension_semantics<parallel>], iteration_bounds = array<i64: 1>, scalar_prefetch = 0 : i64, scratch_operands = 0 : i64, tpu.core_type = #tpu.core_type<tc>, window_params = [{pipeline_mode = #tpu.pipeline_mode<synchronous>, transform_indices = @transform_0, window_bounds = array<i64: 1, 8>}, {pipeline_mode = #tpu.pipeline_mode<synchronous>, transform_indices = @transform_1, window_bounds = array<i64: 8, 1>}, {transform_indices = @transform_2, window_bounds = array<i64: 8, 128>}, {transform_indices = @transform_3, window_bounds = array<i64: 1, 128>}, {transform_indices = @transform_4, window_bounds = array<i64: 1, 128>}, {transform_indices = @transform_5, window_bounds = array<i64: 1, 128>}, {transform_indices = @transform_6, window_bounds = array<i64: 8, 128>}]} {
    %c0 = arith.constant 0 : index
    %c0_0 = arith.constant 0 : index
    %0 = vector.load %arg3[%c0, %c0_0] : memref<8x128xf32, #tpu.memory_space<vmem>>, vector<8x128xf32>
    %c0_1 = arith.constant 0 : index
    %c0_2 = arith.constant 0 : index
    %1 = vector.load %arg1[%c0_1, %c0_2] : memref<1x8xi32, #tpu.memory_space<vmem>>, vector<1x8xi32>
    %c0_3 = arith.constant 0 : index
    %c0_4 = arith.constant 0 : index
    %2 = vector.load %arg2[%c0_3, %c0_4] : memref<8x1xf32, #tpu.memory_space<vmem>>, vector<8x1xf32>
    %3 = tpu.iota {dimensions = array<i32: 0>} : vector<8x8xi32>
    %4 = vector.broadcast %1 : vector<1x8xi32> to vector<8x8xi32>
    %5 = arith.cmpi eq, %3, %4 : vector<8x8xi32>
    %6 = arith.extui %5 : vector<8x8xi1> to vector<8x8xi32>
    %7 = arith.sitofp %6 : vector<8x8xi32> to vector<8x8xf32>
    %cst = arith.constant dense<0.000000e+00> : vector<8x128xf32>
    %8 = tpu.matmul %7, %0, %cst {dimension_numbers = #tpu.dot_dimension_numbers<[1], [0], [0], [1], [0, 0, 1, 1], [], []>} : vector<8x8xf32>, vector<8x128xf32>, vector<8x128xf32> -> vector<8x128xf32>
    %9 = arith.mulf %0, %0 : vector<8x128xf32>
    %cst_5 = arith.constant dense<0.000000e+00> : vector<8x128xf32>
    %10 = tpu.matmul %7, %9, %cst_5 {dimension_numbers = #tpu.dot_dimension_numbers<[1], [0], [0], [1], [0, 0, 1, 1], [], []>} : vector<8x8xf32>, vector<8x128xf32>, vector<8x128xf32> -> vector<8x128xf32>
    %11 = vector.broadcast %2 : vector<8x1xf32> to vector<8x128xf32>
    %12 = arith.mulf %8, %11 : vector<8x128xf32>
    %13 = vector.broadcast %2 : vector<8x1xf32> to vector<8x128xf32>
    %14 = arith.mulf %10, %13 : vector<8x128xf32>
    %c0_6 = arith.constant 0 : index
    %c0_7 = arith.constant 0 : index
    %15 = vector.load %arg6[%c0_6, %c0_7] : memref<1x128xf32, #tpu.memory_space<vmem>>, vector<1x128xf32>
    %c0_8 = arith.constant 0 : index
    %c0_9 = arith.constant 0 : index
    %16 = vector.load %arg4[%c0_8, %c0_9] : memref<1x128xf32, #tpu.memory_space<vmem>>, vector<1x128xf32>
    %cst_10 = arith.constant 2.000000e+00 : f32
    %17 = vector.broadcast %cst_10 : f32 to vector<1x128xf32>
    %18 = arith.subf %17, %15 : vector<1x128xf32>
    %19 = arith.mulf %15, %18 : vector<1x128xf32>
    %20 = vector.broadcast %19 : vector<1x128xf32> to vector<8x128xf32>
    %21 = arith.mulf %20, %12 : vector<8x128xf32>
    %22 = arith.mulf %21, %12 : vector<8x128xf32>
    %23 = arith.subf %14, %22 : vector<8x128xf32>
    %cst_11 = arith.constant 0.000000e+00 : f32
    %24 = vector.broadcast %cst_11 : f32 to vector<8x128xf32>
    %25 = arith.maximumf %23, %24 : vector<8x128xf32>
    %26 = vector.broadcast %15 : vector<1x128xf32> to vector<8x128xf32>
    %27 = arith.mulf %26, %12 : vector<8x128xf32>
    %cst_12 = arith.constant 9.99999997E-7 : f32
    %28 = vector.broadcast %cst_12 : f32 to vector<8x128xf32>
    %29 = arith.addf %25, %28 : vector<8x128xf32>
    %30 = math.rsqrt %29 : vector<8x128xf32>
    %31 = vector.broadcast %16 : vector<1x128xf32> to vector<8x128xf32>
    %32 = arith.mulf %31, %30 : vector<8x128xf32>
    %33 = tpu.concatenate %27, %32 in 1 : vector<8x128xf32>, vector<8x128xf32> -> vector<8x256xf32>
    %cst_13 = arith.constant dense<0.000000e+00> : vector<8x256xf32>
    %34 = tpu.matmul %7, %33, %cst_13 {dimension_numbers = #tpu.dot_dimension_numbers<[0], [0], [1], [1], [0, 1, 1, 1], [], []>} : vector<8x8xf32>, vector<8x256xf32>, vector<8x256xf32> -> vector<8x256xf32>
    %35 = vector.extract_strided_slice %34 {offsets = [0, 0], sizes = [8, 128], strides = [1, 1]} : vector<8x256xf32> to vector<8x128xf32>
    %36 = vector.extract_strided_slice %34 {offsets = [0, 128], sizes = [8, 128], strides = [1, 1]} : vector<8x256xf32> to vector<8x128xf32>
    %37 = arith.subf %0, %35 : vector<8x128xf32>
    %38 = arith.mulf %37, %36 : vector<8x128xf32>
    %c0_14 = arith.constant 0 : index
    %c0_15 = arith.constant 0 : index
    %39 = vector.load %arg5[%c0_14, %c0_15] : memref<1x128xf32, #tpu.memory_space<vmem>>, vector<1x128xf32>
    %40 = vector.broadcast %39 : vector<1x128xf32> to vector<8x128xf32>
    %41 = arith.addf %38, %40 : vector<8x128xf32>
    %c0_16 = arith.constant 0 : index
    %c0_17 = arith.constant 0 : index
    %42 = vector.load %arg7[%c0_16, %c0_17] : memref<8x128xf32, #tpu.memory_space<vmem>>, vector<8x128xf32>
    tpu.vector_store %arg7[%c0_16, %c0_17], %41 {strides = array<i32>} : memref<8x128xf32, #tpu.memory_space<vmem>>, vector<8x128xf32>,
    return
  }
  func.func @transform_0(%arg0: i32) -> (i32, i32) {
    %c0_i32 = arith.constant 0 : i32
    %c0_i32_0 = arith.constant 0 : i32
    %c0_i32_1 = arith.constant 0 : i32
    return %c0_i32, %c0_i32_0 : i32, i32
  }
  func.func @transform_1(%arg0: i32) -> (i32, i32) {
    %c0_i32 = arith.constant 0 : i32
    %c0_i32_0 = arith.constant 0 : i32
    %c0_i32_1 = arith.constant 0 : i32
    return %c0_i32, %c0_i32_0 : i32, i32
  }
  func.func @transform_2(%arg0: i32) -> (i32, i32) {
    %c0_i32 = arith.constant 0 : i32
    %c0_i32_0 = arith.constant 0 : i32
    return %c0_i32, %arg0 : i32, i32
  }
  func.func @transform_3(%arg0: i32) -> (i32, i32) {
    %c0_i32 = arith.constant 0 : i32
    %c0_i32_0 = arith.constant 0 : i32
    return %c0_i32, %arg0 : i32, i32
  }
  func.func @transform_4(%arg0: i32) -> (i32, i32) {
    %c0_i32 = arith.constant 0 : i32
    %c0_i32_0 = arith.constant 0 : i32
    return %c0_i32, %arg0 : i32, i32
  }
  func.func @transform_5(%arg0: i32) -> (i32, i32) {
    %c0_i32 = arith.constant 0 : i32
    %c0_i32_0 = arith.constant 0 : i32
    return %c0_i32, %arg0 : i32, i32
  }
  func.func @transform_6(%arg0: i32) -> (i32, i32) {
    %c0_i32 = arith.constant 0 : i32
    %c0_i32_0 = arith.constant 0 : i32
    return %c0_i32, %arg0 : i32, i32
  }
}

</mosaic_0001>

<bundles_post_ra>
// kernel: graph_norm.1
= control target key start
LH: loop header
LB: loop body
LE: loop exit
PB: predicated region body
PF: predicated region fallthrough
CT: control target
= control target key end

     0   :  { %v27_v1 = vlaneseq  ;;  %v401_v2 = vmov 0.0   ;;  %s473_s0 = inlined_call_operand.vmem [shape: s32[1,8], index: 0, kind: input, shape index: {}]   ;;  %s474_s1 = inlined_call_operand.vmem [shape: f32[8,1], index: 1, kind: input, shape index: {}]   ;;  %s475_s2 = inlined_call_operand.vmem [shape: f32[8,128], index: 2, kind: input, shape index: {}]   ;;  %s476_s3 = inlined_call_operand.vmem [shape: f32[1,128], index: 3, kind: input, shape index: {}]   ;;  %s477_s4 = inlined_call_operand.vmem [shape: f32[1,128], index: 4, kind: input, shape index: {}]   ;;  %s478_s5 = inlined_call_operand.vmem [shape: f32[1,128], index: 5, kind: input, shape index: {}]   ;;  %s479_s6 = inlined_call_operand.hbm [shape: f32[8,128], index: 6, kind: output, shape index: {}]  }
   0x1   :  { %v24_v0 = vld [vmem:[%s475_s2] sm:$0xff]  ;;  %360 = vmatprep.subr.mxu0 %v401_v2  ;;  %365 = vmatprep.subr.mxu1 %v401_v2 }
   0x2   :  { %v110_v3 = vmul.f32 %v24_v0, %v24_v0  ;;  %v349_v4 = vld [vmem:[%s473_s0] ss:$0 sm:$0xff] }
   0x3   :  { %11 = vsyncpa [#allocation3], 0  ;;  %361 = vmatpush3.msra.mxu0 %v24_v0  ;;  %vm402_vm0 = vmmov 0   ;;  %v28_v5 = vshrl.u32 %v27_v1, 7  ;;  %v26_v6 = vld [vmem:[%s474_s1] sm:$0xff]  ;;  %vm36_vm1 = vcmask 64512  }
   0x4   :  { %362 = vmatprep.mubr.msk.f32.mxu0 %vm402_vm0, %v401_v2  ;;  %366 = vmatpush3.msra.mxu1 %v110_v3  ;;  %v403_v7 = vmov 0   ;;  %v188_v9 = vld [vmem:[%s478_s5] sm:$0x1]  ;;  %s404_s29 = smov [#allocation2]  }
   0x5   :  { %367 = vmatprep.mubr.msk.f32.mxu1 %vm402_vm0, %v401_v2  ;;  %vm33_vm2 = vcmp.eq.s32.totalorder %v28_v5, %v349_v4  ;;  %374 = vset.pattern.permute.xlu0 %v403_v7  ;;  %v190_v10 = vsub.f32 2.0, %v188_v9  ;;  %v195_v11 = vsub.s32 0, %v28_v5  ;;  %v353_v28 = vld [vmem:[%s476_s3] ss:$0 sm:$0xff]  ;;  %s341_s30 = sshll.u32 %s404_s29, 4  ;;  %s342_s30 = int_to_ptr.vmem [resolvable:$true] %s341_s30 }
   0x6   :  { %v350_v8 = vsel %vm33_vm2, 1.0, %v401_v2  ;;  %183 = vperm.xlu0 %374, %v26_v6   ;;  %v355_v35 = vld [vmem:[%s477_s4] ss:$0 sm:$0xff]  ;;  %s377_s3 = scalar_lea.vmem %s342_s30, 128  ;;  %p382_p1 = scmp.lt.s32.totalorder %s342_s30, %s342_s30 }
   0x7   :  { %363 = vmatmul.mubr.msk.f32.vlgmr.msra.gmra.mrb[0].mxu0 %vm36_vm1, %v350_v8  ;;  %368 = vmatmul.mubr.msk.f32.vlgmr.msra.gmra.mrb[0].mxu1 %vm36_vm1, %v350_v8  ;;  %v191_v12 = vmul.f32 %v190_v10, %v188_v9  ;;  %v206_v15 = vrot.slane %v188_v9, %v195_v11  ;;  %p378_p0 = scmp.ne.s32.totalorder %s342_s30, %s377_s3  ;;  %p383_p2 = scmp.lt.s32.totalorder %s377_s3, %s377_s3 }
   0x8   :  { %317 = vmatprep.mubr.f32.mxu0 %v401_v2 }
   0x9   :  { %v196_v14 = vrot.slane %v191_v12, %v195_v11  ;;  %p384_p3 = por %p383_p2, %p382_p1 }
   0xb   :  { %p385_p4 = pnand %p384_p3, %p378_p0 }
  0x24   :  { %218 = vxpose.xlu0.b32.start.end [1/1] (short) (narrow) %v350_v8, 8 }
  0x85   :  { %v184_v13 = vpop.permute.xlu0 %183 }
  0xa4   :  { %v234_v31 = vpop.trf.xlu0 }
  0xda   :  { %v106_v16 = vpop.f32.mrb[0].mxu0  ;;  %v177_v17 = vpop.f32.mrb[0].mxu1 }
  0xdb   :  { %v186_v18 = vmul.f32 %v184_v13, %v106_v16  ;;  %v364_v19 = vpop.f32.mrb[1].mxu0  ;;  %v369_v20 = vpop.f32.mrb[1].mxu1  ;;  %v187_v23 = vmul.f32 %v184_v13, %v177_v17 }
  0xdd   :  { %v198_v21 = vmul.f32 %v196_v14, %v186_v18  ;;  %v208_v22 = vmul.f32 %v206_v15, %v186_v18 }
  0xdf   :  { %v199_v24 = vmul.f32 %v198_v21, %v186_v18 }
  0xe1   :  { %v200_v25 = vsub.f32 %v187_v23, %v199_v24 }
  0xe3   :  { %v201_v26 = vmax.f32 %v200_v25, 0.0 }
  0xe5   :  { %v209_v27 = vadd.f32 1e-06, %v201_v26 }
  0xe7   :  { %375 = vrsqrt.f32 %v209_v27 }
  0xf1   :  { %v376_v29 = vpop.eup %375 }
  0xf2   :  { %v217_v30 = vmul.f32 %v376_v29, %v353_v28 }
  0xf4   :  { %253 = vmatprep.subr.mxu0 %v217_v30 }
  0xf5   :  { %254 = vmatpush1.msra.mxu0 %v208_v22 }
  0xf6   :  { %354 = vmatmul.mubr.msk.f32.vlgmr.msra.gmra.mrb[2].mxu0 %vm36_vm1, %v234_v31 }
 0x1c9   :  { %v319_v32 = vpop.f32.mrb[2].mxu0 }
 0x1ca   :  { %v324_v33 = vsub.f32 %v24_v0, %v319_v32  ;;  %v321_v34 = vpop.f32.mrb[3].mxu0 }
 0x1cc   :  { %v325_v36 = vmul.f32 %v324_v33, %v321_v34 }
 0x1ce   :  { %v333_v37 = vadd.f32 %v355_v35, %v325_v36 }
 0x1d0   :  { %334 = vst [vmem:[#allocation2] sm:$0xff] %v333_v37 }
 0x1d1   :  { %388 = shalt.err (!%p385_p4)
}
 0x1d2   :  { %s389_s9 = scalar_lea.hbm %s479_s6, 128 }
 0x1d3   :  { %p390_p5 = scmp.ne.s32.totalorder %s479_s6, %s389_s9  ;;  %p393_p6 = scmp.lt.u32.totalorder %s389_s9, %s479_s6 }
 0x1d5   :  { %p395_p7 = pnand %p393_p6, %p390_p5 }
 0x1d7   :  { %398 = shalt.err (!%p395_p7)
}
 0x1d8   :  { %344 = dma.vmem_to_hbm [thread:$0]  %s342_s30, 128, %s479_s6, [#allocation3]  }
 0x1d9   :  { %399 = dma.done.wait [#allocation3], 128  }
 0x1da   :  { %400 = vsyncadd [#allocation3], 4294967168 }
 0x1db   :  { %348 = vsyncpa [#allocation3], 1 }

</bundles_post_ra>
